<compile_context>
chip_gen: v6e
topology: v6e:2x2x1
jax: 0.10.0
libtpu: 0.0.40
codegen_flags: <defaults>
</compile_context>

<pallas_src>
import math

import jax
import jax.numpy as jnp
from jax.experimental import pallas as pl
from jax.experimental.pallas import tpu as pltpu

EPS = 1e-5
LANE = 128


def classify_kernel(x_ref, w1, b1, w2, b2, w3, b3, w4, b4, out_ref):
    """Fused MLP: (Linear+foldedBN -> ReLU) x3 -> Linear+foldedBN."""
    h = x_ref[...]
    h = jnp.maximum(
        jnp.dot(h, w1[...], preferred_element_type=jnp.float32) + b1[...], 0.0)
    h = jnp.maximum(
        jnp.dot(h, w2[...], preferred_element_type=jnp.float32) + b2[...], 0.0)
    h = jnp.maximum(
        jnp.dot(h, w3[...], preferred_element_type=jnp.float32) + b3[...], 0.0)
    # TODO(synk): Dropout(p=0.5) between layers is identity in eval mode; the
    # train-mode stochastic mask is intentionally omitted.
    out_ref[...] = (
        jnp.dot(h, w4[...], preferred_element_type=jnp.float32) + b4[...])


def init_params(key, n_inputs=32, n_outputs=6):
    """Kaiming-uniform (nonlinearity='relu') weights + default bias/BN init,
    matching the PyTorch module's explicit kaiming_uniform_ calls."""
    dims = [(n_inputs, 64), (64, 128), (128, 64), (64, n_outputs)]
    params = []
    keys = jax.random.split(key, 2 * len(dims))
    for i, (fin, fout) in enumerate(dims):
        kw, kb = keys[2 * i], keys[2 * i + 1]
        # kaiming_uniform_(nonlinearity='relu'): bound = sqrt(2) * sqrt(3/fan_in)
        bound_w = math.sqrt(2.0) * math.sqrt(3.0 / fin)
        W = jax.random.uniform(kw, (fin, fout), jnp.float32, -bound_w, bound_w)
        # default Linear bias init: U(-1/sqrt(fan_in), 1/sqrt(fan_in))
        bound_b = 1.0 / math.sqrt(fin)
        b = jax.random.uniform(kb, (1, fout), jnp.float32, -bound_b, bound_b)
        # BatchNorm1d defaults (fresh running stats; load trained stats here if
        # reproducing a trained checkpoint).
        gamma = jnp.ones((1, fout), jnp.float32)
        beta = jnp.zeros((1, fout), jnp.float32)
        rmean = jnp.zeros((1, fout), jnp.float32)
        rvar = jnp.ones((1, fout), jnp.float32)
        params += [W, b, gamma, beta, rmean, rvar]
    return params


def _fold_bn(W, b, gamma, beta, mean, var, eps=EPS):
    """Fold eval-mode BatchNorm1d into the preceding Linear layer."""
    scale = gamma * jax.lax.rsqrt(var + eps)        # (1, fout)
    W_f = W * scale                                 # (fin, fout) * (1, fout)
    b_f = (b - mean) * scale + beta                 # (1, fout)
    return W_f, b_f


def _round_up(x, m):
    return ((x + m - 1) // m) * m


def classify_forward(x, params):
    """x: (batch, n_inputs) float32. Returns (batch, n_outputs) float32."""
    batch, n_in = x.shape

    # --- Fold BN into Linear weights/biases (9 kernel operands total). ---
    folded = []
    for layer in range(4):
        W, b, g, be, m, v = params[6 * layer:6 * layer + 6]
        folded.append(_fold_bn(W, b, g, be, m, v))
    (w1, b1), (w2, b2), (w3, b3), (w4, b4) = folded
    n_out = w4.shape[1]

    # --- Pad last layer to a lane-dense 128-wide output (zero columns). ---
    n_out_pad = _round_up(n_out, LANE)
    w4p = jnp.zeros((w4.shape[0], n_out_pad), jnp.float32).at[:, :n_out].set(w4)
    b4p = jnp.zeros((1, n_out_pad), jnp.float32).at[:, :n_out].set(b4)

    # --- Batch tiling: M block multiple of 8, capped at 128, grid parallel. ---
    block_m = min(128, _round_up(batch, 8))
    batch_pad = _round_up(batch, block_m)
    if batch_pad != batch:
        x = jnp.zeros((batch_pad, n_in), x.dtype).at[:batch, :].set(x)
    n_blocks = batch_pad // block_m

    weight_args = [w1, b1, w2, b2, w3, b3, w4p, b4p]
    weight_specs = [
        pl.BlockSpec(a.shape, lambda i: (0, 0)) for a in weight_args
    ]

    out_pad = pl.pallas_call(
        classify_kernel,
        grid=(n_blocks,),
        in_specs=[pl.BlockSpec((block_m, n_in), lambda i: (i, 0))]
        + weight_specs,
        out_specs=pl.BlockSpec((block_m, n_out_pad), lambda i: (i, 0)),
        out_shape=jax.ShapeDtypeStruct((batch_pad, n_out_pad), jnp.float32),
        compiler_params=pltpu.CompilerParams(
            dimension_semantics=("parallel",)),
    )(x, *weight_args)

    return out_pad[:batch, :n_out]


def classify_reference(x, params):
    """Plain-JAX reference (eval mode) for correctness checking."""
    h = x
    for layer in range(4):
        W, b, g, be, m, v = params[6 * layer:6 * layer + 6]
        h = h @ W + b
        h = (h - m) * jax.lax.rsqrt(v + EPS) * g + be
        if layer < 3:
            h = jnp.maximum(h, 0.0)
    return h


if __name__ == "__main__":
    key = jax.random.PRNGKey(0)
    k_x, k_p = jax.random.split(key)

    batch, n_inputs, n_outputs = 8, 32, 6
    x = jax.random.normal(k_x, (batch, n_inputs), dtype=jnp.float32)
    params = init_params(k_p, n_inputs=n_inputs, n_outputs=n_outputs)

    out = classify_forward(x, params)
    out = jax.block_until_ready(out)
    assert out.shape == (batch, n_outputs) and out.dtype == jnp.float32

    ref = classify_reference(x, params)
    assert jnp.allclose(out, ref, atol=1e-4, rtol=1e-4), (
        f"max abs err {jnp.max(jnp.abs(out - ref))}")

    print("KERNEL_OK")
</pallas_src>

<mosaic_0001>
module attributes {stable_mosaic.version = 11 : i64} {
  func.func @classify_kernel(%arg0: i32, %arg1: memref<8x32xf32, #tpu.memory_space<vmem>>, %arg2: memref<32x64xf32, #tpu.memory_space<vmem>>, %arg3: memref<1x64xf32, #tpu.memory_space<vmem>>, %arg4: memref<64x128xf32, #tpu.memory_space<vmem>>, %arg5: memref<1x128xf32, #tpu.memory_space<vmem>>, %arg6: memref<128x64xf32, #tpu.memory_space<vmem>>, %arg7: memref<1x64xf32, #tpu.memory_space<vmem>>, %arg8: memref<64x128xf32, #tpu.memory_space<vmem>>, %arg9: memref<1x128xf32, #tpu.memory_space<vmem>>, %arg10: memref<8x128xf32, #tpu.memory_space<vmem>>) attributes {dimension_semantics = [#tpu.dimension_semantics<parallel>], iteration_bounds = array<i64: 1>, scalar_prefetch = 0 : i64, scratch_operands = 0 : i64, tpu.core_type = #tpu.core_type<tc>, window_params = [{transform_indices = @transform_0, window_bounds = array<i64: 8, 32>}, {pipeline_mode = #tpu.pipeline_mode<synchronous>, transform_indices = @transform_1, window_bounds = array<i64: 32, 64>}, {pipeline_mode = #tpu.pipeline_mode<synchronous>, transform_indices = @transform_2, window_bounds = array<i64: 1, 64>}, {pipeline_mode = #tpu.pipeline_mode<synchronous>, transform_indices = @transform_3, window_bounds = array<i64: 64, 128>}, {pipeline_mode = #tpu.pipeline_mode<synchronous>, transform_indices = @transform_4, window_bounds = array<i64: 1, 128>}, {pipeline_mode = #tpu.pipeline_mode<synchronous>, transform_indices = @transform_5, window_bounds = array<i64: 128, 64>}, {pipeline_mode = #tpu.pipeline_mode<synchronous>, transform_indices = @transform_6, window_bounds = array<i64: 1, 64>}, {pipeline_mode = #tpu.pipeline_mode<synchronous>, transform_indices = @transform_7, window_bounds = array<i64: 64, 128>}, {pipeline_mode = #tpu.pipeline_mode<synchronous>, transform_indices = @transform_8, window_bounds = array<i64: 1, 128>}, {transform_indices = @transform_9, window_bounds = array<i64: 8, 128>}]} {
    %c0 = arith.constant 0 : index
    %c0_0 = arith.constant 0 : index
    %0 = vector.load %arg1[%c0, %c0_0] : memref<8x32xf32, #tpu.memory_space<vmem>>, vector<8x32xf32>
    %c0_1 = arith.constant 0 : index
    %c0_2 = arith.constant 0 : index
    %1 = vector.load %arg2[%c0_1, %c0_2] : memref<32x64xf32, #tpu.memory_space<vmem>>, vector<32x64xf32>
    %cst = arith.constant dense<0.000000e+00> : vector<8x64xf32>
    %2 = tpu.matmul %0, %1, %cst {dimension_numbers = #tpu.dot_dimension_numbers<[1], [0], [0], [1], [0, 0, 1, 1], [], []>} : vector<8x32xf32>, vector<32x64xf32>, vector<8x64xf32> -> vector<8x64xf32>
    %c0_3 = arith.constant 0 : index
    %c0_4 = arith.constant 0 : index
    %3 = vector.load %arg3[%c0_3, %c0_4] : memref<1x64xf32, #tpu.memory_space<vmem>>, vector<1x64xf32>
    %4 = vector.broadcast %3 : vector<1x64xf32> to vector<8x64xf32>
    %5 = arith.addf %2, %4 : vector<8x64xf32>
    %cst_5 = arith.constant 0.000000e+00 : f32
    %6 = vector.broadcast %cst_5 : f32 to vector<8x64xf32>
    %7 = arith.maximumf %5, %6 : vector<8x64xf32>
    %c0_6 = arith.constant 0 : index
    %c0_7 = arith.constant 0 : index
    %8 = vector.load %arg4[%c0_6, %c0_7] : memref<64x128xf32, #tpu.memory_space<vmem>>, vector<64x128xf32>
    %cst_8 = arith.constant dense<0.000000e+00> : vector<8x128xf32>
    %9 = tpu.matmul %7, %8, %cst_8 {dimension_numbers = #tpu.dot_dimension_numbers<[1], [0], [0], [1], [0, 0, 1, 1], [], []>} : vector<8x64xf32>, vector<64x128xf32>, vector<8x128xf32> -> vector<8x128xf32>
    %c0_9 = arith.constant 0 : index
    %c0_10 = arith.constant 0 : index
    %10 = vector.load %arg5[%c0_9, %c0_10] : memref<1x128xf32, #tpu.memory_space<vmem>>, vector<1x128xf32>
    %11 = vector.broadcast %10 : vector<1x128xf32> to vector<8x128xf32>
    %12 = arith.addf %9, %11 : vector<8x128xf32>
    %cst_11 = arith.constant 0.000000e+00 : f32
    %13 = vector.broadcast %cst_11 : f32 to vector<8x128xf32>
    %14 = arith.maximumf %12, %13 : vector<8x128xf32>
    %c0_12 = arith.constant 0 : index
    %c0_13 = arith.constant 0 : index
    %15 = vector.load %arg6[%c0_12, %c0_13] : memref<128x64xf32, #tpu.memory_space<vmem>>, vector<128x64xf32>
    %cst_14 = arith.constant dense<0.000000e+00> : vector<8x64xf32>
    %16 = tpu.matmul %14, %15, %cst_14 {dimension_numbers = #tpu.dot_dimension_numbers<[1], [0], [0], [1], [0, 0, 1, 1], [], []>} : vector<8x128xf32>, vector<128x64xf32>, vector<8x64xf32> -> vector<8x64xf32>
    %c0_15 = arith.constant 0 : index
    %c0_16 = arith.constant 0 : index
    %17 = vector.load %arg7[%c0_15, %c0_16] : memref<1x64xf32, #tpu.memory_space<vmem>>, vector<1x64xf32>
    %18 = vector.broadcast %17 : vector<1x64xf32> to vector<8x64xf32>
    %19 = arith.addf %16, %18 : vector<8x64xf32>
    %cst_17 = arith.constant 0.000000e+00 : f32
    %20 = vector.broadcast %cst_17 : f32 to vector<8x64xf32>
    %21 = arith.maximumf %19, %20 : vector<8x64xf32>
    %c0_18 = arith.constant 0 : index
    %c0_19 = arith.constant 0 : index
    %22 = vector.load %arg8[%c0_18, %c0_19] : memref<64x128xf32, #tpu.memory_space<vmem>>, vector<64x128xf32>
    %cst_20 = arith.constant dense<0.000000e+00> : vector<8x128xf32>
    %23 = tpu.matmul %21, %22, %cst_20 {dimension_numbers = #tpu.dot_dimension_numbers<[1], [0], [0], [1], [0, 0, 1, 1], [], []>} : vector<8x64xf32>, vector<64x128xf32>, vector<8x128xf32> -> vector<8x128xf32>
    %c0_21 = arith.constant 0 : index
    %c0_22 = arith.constant 0 : index
    %24 = vector.load %arg9[%c0_21, %c0_22] : memref<1x128xf32, #tpu.memory_space<vmem>>, vector<1x128xf32>
    %25 = vector.broadcast %24 : vector<1x128xf32> to vector<8x128xf32>
    %26 = arith.addf %23, %25 : vector<8x128xf32>
    %c0_23 = arith.constant 0 : index
    %c0_24 = arith.constant 0 : index
    %27 = vector.load %arg10[%c0_23, %c0_24] : memref<8x128xf32, #tpu.memory_space<vmem>>, vector<8x128xf32>
    tpu.vector_store %arg10[%c0_23, %c0_24], %26 {strides = array<i32>} : memref<8x128xf32, #tpu.memory_space<vmem>>, vector<8x128xf32>,
    return
  }
  func.func @transform_0(%arg0: i32) -> (i32, i32) {
    %c0_i32 = arith.constant 0 : i32
    %c0_i32_0 = arith.constant 0 : i32
    return %arg0, %c0_i32 : i32, i32
  }
  func.func @transform_1(%arg0: i32) -> (i32, i32) {
    %c0_i32 = arith.constant 0 : i32
    %c0_i32_0 = arith.constant 0 : i32
    %c0_i32_1 = arith.constant 0 : i32
    return %c0_i32, %c0_i32_0 : i32, i32
  }
  func.func @transform_2(%arg0: i32) -> (i32, i32) {
    %c0_i32 = arith.constant 0 : i32
    %c0_i32_0 = arith.constant 0 : i32
    %c0_i32_1 = arith.constant 0 : i32
    return %c0_i32, %c0_i32_0 : i32, i32
  }
  func.func @transform_3(%arg0: i32) -> (i32, i32) {
    %c0_i32 = arith.constant 0 : i32
    %c0_i32_0 = arith.constant 0 : i32
    %c0_i32_1 = arith.constant 0 : i32
    return %c0_i32, %c0_i32_0 : i32, i32
  }
  func.func @transform_4(%arg0: i32) -> (i32, i32) {
    %c0_i32 = arith.constant 0 : i32
    %c0_i32_0 = arith.constant 0 : i32
    %c0_i32_1 = arith.constant 0 : i32
    return %c0_i32, %c0_i32_0 : i32, i32
  }
  func.func @transform_5(%arg0: i32) -> (i32, i32) {
    %c0_i32 = arith.constant 0 : i32
    %c0_i32_0 = arith.constant 0 : i32
    %c0_i32_1 = arith.constant 0 : i32
    return %c0_i32, %c0_i32_0 : i32, i32
  }
  func.func @transform_6(%arg0: i32) -> (i32, i32) {
    %c0_i32 = arith.constant 0 : i32
    %c0_i32_0 = arith.constant 0 : i32
    %c0_i32_1 = arith.constant 0 : i32
    return %c0_i32, %c0_i32_0 : i32, i32
  }
  func.func @transform_7(%arg0: i32) -> (i32, i32) {
    %c0_i32 = arith.constant 0 : i32
    %c0_i32_0 = arith.constant 0 : i32
    %c0_i32_1 = arith.constant 0 : i32
    return %c0_i32, %c0_i32_0 : i32, i32
  }
  func.func @transform_8(%arg0: i32) -> (i32, i32) {
    %c0_i32 = arith.constant 0 : i32
    %c0_i32_0 = arith.constant 0 : i32
    %c0_i32_1 = arith.constant 0 : i32
    return %c0_i32, %c0_i32_0 : i32, i32
  }
  func.func @transform_9(%arg0: i32) -> (i32, i32) {
    %c0_i32 = arith.constant 0 : i32
    %c0_i32_0 = arith.constant 0 : i32
    return %arg0, %c0_i32 : i32, i32
  }
}

</mosaic_0001>

<bundles_post_ra>
// kernel: tpu_custom_call.1
= control target key start
LH: loop header
LB: loop body
LE: loop exit
PB: predicated region body
PF: predicated region fallthrough
CT: control target
= control target key end

     0   :  { %v563_v1 = vmov 0.0   ;;  %vm564_vm0 = vmmov 0   ;;  %s788_s0 = inlined_call_operand.vmem [shape: f32[8,32], index: 0, kind: input, shape index: {}]   ;;  %s789_s1 = inlined_call_operand.vmem [shape: f32[32,64], index: 1, kind: input, shape index: {}]   ;;  %s790_s2 = inlined_call_operand.vmem [shape: f32[1,64], index: 2, kind: input, shape index: {}]   ;;  %s791_s3 = inlined_call_operand.vmem [shape: f32[64,128], index: 3, kind: input, shape index: {}]   ;;  %s792_s4 = inlined_call_operand.vmem [shape: f32[1,128], index: 4, kind: input, shape index: {}]   ;;  %s793_s5 = inlined_call_operand.vmem [shape: f32[128,64], index: 5, kind: input, shape index: {}]   ;;  %s794_s6 = inlined_call_operand.vmem [shape: f32[1,64], index: 6, kind: input, shape index: {}]   ;;  %s795_s7 = inlined_call_operand.vmem [shape: f32[64,128], index: 7, kind: input, shape index: {}]   ;;  %s796_s8 = inlined_call_operand.vmem [shape: f32[1,128], index: 8, kind: input, shape index: {}]   ;;  %s797_s9 = inlined_call_operand.hbm [shape: f32[8,128], index: 9, kind: output, shape index: {}]  }
   0x1   :  { %v37_v0 = vld [vmem:[%s789_s1 + $0x18] sm:$0xff]  ;;  %454 = vmatprep.subr.mxu0 %v563_v1  ;;  %v36_v2 = vld [vmem:[%s789_s1 + $0x10] sm:$0xff]  ;;  %462 = vmatprep.mubr.msk.f32.mxu0 %vm564_vm0, %v563_v1  ;;  %v35_v5 = vld [vmem:[%s789_s1 + $0x8] sm:$0xff] }
   0x2   :  { %v127_v3 = vld [vmem:[%s791_s3 + $0x38] sm:$0xff]  ;;  %455 = vmatpush3.msra.mxu0 %v37_v0  ;;  %465 = vmatprep.subr.mxu1 %v563_v1  ;;  %v126_v4 = vld [vmem:[%s791_s3 + $0x30] sm:$0xff] }
   0x3   :  { %456 = vmatprep.subr.mxu0 %v563_v1  ;;  %466 = vmatpush3.msra.mxu1 %v127_v3 }
   0x4   :  { %14 = vsyncpa [#allocation3], 0  ;;  %457 = vmatpush3.msra.mxu0 %v36_v2  ;;  %467 = vmatprep.subr.mxu1 %v563_v1  ;;  %v125_v6 = vld [vmem:[%s791_s3 + $0x28] sm:$0xff]  ;;  %v34_v7 = vld [vmem:[%s789_s1] sm:$0xff]  ;;  %vm45_vm1 = vcmask 261120   ;;  %vm135_vm2 = vcmask 523264  }
   0x5   :  { %458 = vmatprep.subr.mxu0 %v563_v1  ;;  %468 = vmatpush3.msra.mxu1 %v126_v4  ;;  %v33_v8 = vld [vmem:[%s788_s0] sm:$0xff]  ;;  %v123_v10 = vld [vmem:[%s791_s3 + $0x18] sm:$0xff]  ;;  %v122_v11 = vld [vmem:[%s791_s3 + $0x10] sm:$0xff]  ;;  %s565_s17 = smov [#allocation2]  }
   0x6   :  { %459 = vmatpush3.msra.mxu0 %v35_v5  ;;  %469 = vmatprep.subr.mxu1 %v563_v1  ;;  %v124_v9 = vld [vmem:[%s791_s3 + $0x20] sm:$0xff]  ;;  %v121_v12 = vld [vmem:[%s791_s3 + $0x8] sm:$0xff]  ;;  %v225_v14 = vld [vmem:[%s793_s5 + $0x78] sm:$0xff] }
   0x7   :  { %460 = vmatprep.subr.mxu0 %v563_v1  ;;  %470 = vmatpush3.msra.mxu1 %v125_v6  ;;  %v120_v13 = vld [vmem:[%s791_s3] sm:$0xff]  ;;  %v224_v15 = vld [vmem:[%s793_s5 + $0x70] sm:$0xff]  ;;  %v223_v16 = vld [vmem:[%s793_s5 + $0x68] sm:$0xff]  ;;  %s399_s3 = sshll.u32 %s565_s17, 4  ;;  %s400_s3 = int_to_ptr.vmem [resolvable:$true] %s399_s3 }
   0x8   :  { %461 = vmatpush3.msra.mxu0 %v34_v7  ;;  %471 = vmatprep.subr.mxu1 %v563_v1  ;;  %v222_v17 = vld [vmem:[%s793_s5 + $0x60] sm:$0xff]  ;;  %v221_v18 = vld [vmem:[%s793_s5 + $0x58] sm:$0xff]  ;;  %v220_v19 = vld [vmem:[%s793_s5 + $0x50] sm:$0xff]  ;;  %p546_p1 = scmp.lt.s32.totalorder %s400_s3, %s400_s3 }
   0x9   :  { %463 = vmatmul.mubr.msk.f32.vlgmr.msra.gmra.mxu0 %vm45_vm1, %v33_v8  ;;  %472 = vmatpush3.msra.mxu1 %v124_v9  ;;  %v219_v20 = vld [vmem:[%s793_s5 + $0x48] sm:$0xff]  ;;  %v218_v21 = vld [vmem:[%s793_s5 + $0x40] sm:$0xff]  ;;  %v217_v22 = vld [vmem:[%s793_s5 + $0x38] sm:$0xff] }
   0xa   :  { %473 = vmatprep.subr.mxu1 %v563_v1  ;;  %481 = vmatprep.mubr.msk.f32.mxu1 %vm564_vm0, %v563_v1  ;;  %v216_v23 = vld [vmem:[%s793_s5 + $0x30] sm:$0xff]  ;;  %v215_v24 = vld [vmem:[%s793_s5 + $0x28] sm:$0xff]  ;;  %v214_v25 = vld [vmem:[%s793_s5 + $0x20] sm:$0xff] }
   0xb   :  { %474 = vmatpush3.msra.mxu1 %v123_v10  ;;  %484 = vmatprep.subr.mxu0 %v563_v1  ;;  %v213_v26 = vld [vmem:[%s793_s5 + $0x18] sm:$0xff]  ;;  %v407_v27 = vld [vmem:[%s790_s2] ss:$0 sm:$0xff]  ;;  %v212_v32 = vld [vmem:[%s793_s5 + $0x10] sm:$0xff] }
   0xc   :  { %475 = vmatprep.subr.mxu1 %v563_v1  ;;  %516 = vmatprep.mubr.msk.f32.mxu0 %vm564_vm0, %v563_v1  ;;  %v211_v33 = vld [vmem:[%s793_s5 + $0x8] sm:$0xff]  ;;  %v210_v34 = vld [vmem:[%s793_s5] sm:$0xff]  ;;  %v311_v35 = vld [vmem:[%s795_s7 + $0x38] sm:$0xff] }
   0xd   :  { %476 = vmatpush3.msra.mxu1 %v122_v11  ;;  %485 = vmatpush3.msra.mxu0 %v225_v14  ;;  %v310_v36 = vld [vmem:[%s795_s7 + $0x30] sm:$0xff]  ;;  %v309_v37 = vld [vmem:[%s795_s7 + $0x28] sm:$0xff]  ;;  %v308_v38 = vld [vmem:[%s795_s7 + $0x20] sm:$0xff] }
   0xe   :  { %477 = vmatprep.subr.mxu1 %v563_v1  ;;  %486 = vmatprep.subr.mxu0 %v563_v1  ;;  %v307_v39 = vld [vmem:[%s795_s7 + $0x18] sm:$0xff]  ;;  %v409_v40 = vld [vmem:[%s792_s4] ss:$0 sm:$0xff]  ;;  %v306_v45 = vld [vmem:[%s795_s7 + $0x10] sm:$0xff] }
   0xf   :  { %478 = vmatpush3.msra.mxu1 %v121_v12  ;;  %487 = vmatpush3.msra.mxu0 %v224_v15  ;;  %v305_v46 = vld [vmem:[%s795_s7 + $0x8] sm:$0xff]  ;;  %v304_v47 = vld [vmem:[%s795_s7] sm:$0xff]  ;;  %s541_s7 = scalar_lea.vmem %s400_s3, 128 }
  0x10   :  { %479 = vmatprep.subr.mxu1 %v563_v1  ;;  %488 = vmatprep.subr.mxu0 %v563_v1  ;;  %v411_v48 = vld [vmem:[%s794_s6] ss:$0 sm:$0xff]  ;;  %p542_p0 = scmp.ne.s32.totalorder %s400_s3, %s541_s7  ;;  %p547_p2 = scmp.lt.s32.totalorder %s541_s7, %s541_s7 }
  0x11   :  { %480 = vmatpush3.msra.mxu1 %v120_v13  ;;  %489 = vmatpush3.msra.mxu0 %v223_v16  ;;  %v412_v53 = vld [vmem:[%s796_s8] ss:$0 sm:$0xff] }
  0x12   :  { %519 = vmatprep.subr.mxu1 %v563_v1  ;;  %490 = vmatprep.subr.mxu0 %v563_v1  ;;  %p548_p3 = por %p547_p2, %p546_p1 }
  0x13   :  { %491 = vmatpush3.msra.mxu0 %v222_v17 }
  0x14   :  { %492 = vmatprep.subr.mxu0 %v563_v1  ;;  %p549_p4 = pnand %p548_p3, %p542_p0 }
  0x15   :  { %493 = vmatpush3.msra.mxu0 %v221_v18 }
  0x16   :  { %494 = vmatprep.subr.mxu0 %v563_v1 }
  0x17   :  { %495 = vmatpush3.msra.mxu0 %v220_v19 }
  0x18   :  { %496 = vmatprep.subr.mxu0 %v563_v1 }
  0x19   :  { %497 = vmatpush3.msra.mxu0 %v219_v20 }
  0x1a   :  { %498 = vmatprep.subr.mxu0 %v563_v1 }
  0x1b   :  { %499 = vmatpush3.msra.mxu0 %v218_v21 }
  0x1c   :  { %500 = vmatprep.subr.mxu0 %v563_v1 }
  0x1d   :  { %501 = vmatpush3.msra.mxu0 %v217_v22 }
  0x1e   :  { %502 = vmatprep.subr.mxu0 %v563_v1 }
  0x1f   :  { %503 = vmatpush3.msra.mxu0 %v216_v23 }
  0x20   :  { %504 = vmatprep.subr.mxu0 %v563_v1 }
  0x21   :  { %505 = vmatpush3.msra.mxu0 %v215_v24 }
  0x22   :  { %506 = vmatprep.subr.mxu0 %v563_v1 }
  0x23   :  { %507 = vmatpush3.msra.mxu0 %v214_v25 }
  0x24   :  { %508 = vmatprep.subr.mxu0 %v563_v1 }
  0x25   :  { %509 = vmatpush3.msra.mxu0 %v213_v26 }
  0x26   :  { %510 = vmatprep.subr.mxu0 %v563_v1 }
  0x27   :  { %511 = vmatpush3.msra.mxu0 %v212_v32 }
  0x28   :  { %512 = vmatprep.subr.mxu0 %v563_v1 }
  0x29   :  { %513 = vmatpush3.msra.mxu0 %v211_v33 }
  0x2a   :  { %514 = vmatprep.subr.mxu0 %v563_v1 }
  0x2b   :  { %515 = vmatpush3.msra.mxu0 %v210_v34 }
  0xc9   :  { %v115_v28 = vpop.f32.mrf.mxu0 }
  0xca   :  { %v116_v29 = vadd.f32 %v407_v27, %v115_v28 }
  0xcb   :  { %v464_v30 = vpop.f32.mrf.mxu0 }
  0xcc   :  { %v119_v31 = vmax.f32 %v116_v29, 0.0 }
  0xce   :  { %482 = vmatmul.mubr.msk.f32.vlgmr.msra.gmra.mxu1 %vm135_vm2, %v119_v31 }
  0xcf   :  { %535 = vmatprep.mubr.msk.f32.mxu1 %vm564_vm0, %v563_v1  ;;  %520 = vmatpush3.msra.mxu1 %v311_v35 }
  0xd0   :  { %521 = vmatprep.subr.mxu1 %v563_v1 }
  0xd1   :  { %522 = vmatpush3.msra.mxu1 %v310_v36 }
  0xd2   :  { %523 = vmatprep.subr.mxu1 %v563_v1 }
  0xd3   :  { %524 = vmatpush3.msra.mxu1 %v309_v37 }
  0xd4   :  { %525 = vmatprep.subr.mxu1 %v563_v1 }
  0xd5   :  { %526 = vmatpush3.msra.mxu1 %v308_v38 }
  0xd6   :  { %527 = vmatprep.subr.mxu1 %v563_v1 }
  0xd7   :  { %528 = vmatpush3.msra.mxu1 %v307_v39 }
  0xd8   :  { %529 = vmatprep.subr.mxu1 %v563_v1 }
  0xd9   :  { %530 = vmatpush3.msra.mxu1 %v306_v45 }
  0xda   :  { %531 = vmatprep.subr.mxu1 %v563_v1 }
  0xdb   :  { %532 = vmatpush3.msra.mxu1 %v305_v46 }
  0xdc   :  { %533 = vmatprep.subr.mxu1 %v563_v1 }
  0xdd   :  { %534 = vmatpush3.msra.mxu1 %v304_v47 }
 0x18e   :  { %v205_v41 = vpop.f32.mrf.mxu1 }
 0x18f   :  { %v206_v42 = vadd.f32 %v409_v40, %v205_v41 }
 0x190   :  { %v483_v43 = vpop.f32.mrf.mxu1 }
 0x191   :  { %v209_v44 = vmax.f32 %v206_v42, 0.0 }
 0x193   :  { %517 = vmatmul.mubr.f32.vlgmr.msra.gmra.mxu0 %v209_v44 }
 0x253   :  { %v299_v49 = vpop.f32.mrf.mxu0 }
 0x254   :  { %v300_v50 = vadd.f32 %v411_v48, %v299_v49 }
 0x255   :  { %v518_v51 = vpop.f32.mrf.mxu0 }
 0x256   :  { %v303_v52 = vmax.f32 %v300_v50, 0.0 }
 0x258   :  { %536 = vmatmul.mubr.msk.f32.vlgmr.msra.gmra.mxu1 %vm135_vm2, %v303_v52 }
 0x318   :  { %v388_v54 = vpop.f32.mrf.mxu1 }
 0x319   :  { %v389_v55 = vadd.f32 %v412_v53, %v388_v54 }
 0x31a   :  { %v537_v56 = vpop.f32.mrf.mxu1 }
 0x31b   :  { %392 = vst [vmem:[#allocation2] sm:$0xff] %v389_v55 }
 0x31c   :  { %552 = shalt.err (!%p549_p4)
}
 0x31d   :  { %402 = dma.vmem_to_hbm [thread:$0]  %s400_s3, 128, %s797_s9, [#allocation3]  }
 0x31e   :  { %561 = dma.done.wait [#allocation3], 128  }
 0x31f   :  { %562 = vsyncadd [#allocation3], 4294967168 }
 0x320   :  { %406 = vsyncpa [#allocation3], 1 }

</bundles_post_ra>
